<compile_context>
chip_gen: v7x
topology: tpu7x:2x2x1
jax: 0.10.0
libtpu: 0.0.40
codegen_flags: <defaults>
</compile_context>

<pallas_src>
import jax
import jax.numpy as jnp
from jax.experimental import pallas as pl
from jax.experimental.pallas import tpu as pltpu


# ---------------------------------------------------------------------------
# Spatial weighted cross-entropy, summed over deep-supervision heads.
# Weighted-mean reduction: sum_p w[t_p] * (lse_p - logit_p[t_p]) / sum_p w[t_p].
# The denominator depends only on the targets (identical for every head), so
#   sum_s CE_s = (sum over s,p of w[t_p]*(lse - picked)) / (sum over p of w[t_p]).
# The kernel emits the per-pixel weighted numerator; the wrapper does the final
# reduce and the division in XLA.
# ---------------------------------------------------------------------------
def _make_spatial_kernel(num_heads):
    def kernel(tgt_ref, wpix_ref, *rest):
        logit_refs = rest[:num_heads]       # each block (1, C, tp), native dtype
        out_ref = rest[num_heads]           # block (1, 1, tp) f32

        C, tp = logit_refs[0].shape[1:]
        tgt = tgt_ref[0]                    # (1, tp) int32
        wpix = wpix_ref[0]                  # (1, tp) f32

        cls = jax.lax.broadcasted_iota(jnp.int32, (C, tp), 0)      # (C, tp)
        onehot = (cls == tgt).astype(jnp.float32)                  # (C, tp)
        ones_1c = jnp.ones((1, C), jnp.float32)

        # Sum of per-pixel logsumexp over heads; sum of logits over heads (for picked).
        lse_sum = jnp.zeros((1, tp), jnp.float32)
        logits_sum = jnp.zeros((C, tp), jnp.float32)
        for lr in logit_refs:               # static Python loop, S is small
            logits = lr[0].astype(jnp.float32)                      # cast in VMEM (cheap VPU)
            m = jnp.max(logits, axis=0, keepdims=True)              # XLU (only xlane op kept)
            e = jnp.exp(logits - m)                                 # EUP
            se = jnp.dot(ones_1c, e, preferred_element_type=jnp.float32)   # MXU (1, tp)
            lse_sum = lse_sum + jnp.log(se) + m
            logits_sum = logits_sum + logits                        # VPU

        # picked summed over heads = sum_c onehot * (sum_s logits_s): one MXU matmul total.
        picked = jnp.dot(ones_1c, onehot * logits_sum,
                         preferred_element_type=jnp.float32)        # (1, tp)

        out_ref[...] = (wpix * (lse_sum - picked))[None, :, :]      # lane-dense f32 store

    return kernel


def _choose_tile(hw, cap):
    """Pick a lane tile (multiple of 128, <= cap) and the padded pixel extent."""
    cap = max(128, cap - cap % 128)
    if hw <= cap:
        tp = -(-hw // 128) * 128            # round up to 128 (pad if needed)
        return tp, tp
    if hw % 128 == 0:
        tp = cap
        while hw % tp:
            tp -= 128
        if tp >= 512:                       # good divisor found -> no padding
            return tp, hw
    # Awkward hw: pad up to a multiple of the largest budget-allowed tile.
    tp = cap
    hw_pad = -(-hw // tp) * tp
    return tp, hw_pad


def spatial_weighted_ce_sum(spatial_heads, instance, class_weight, *,
                            tp_cap=32768, vmem_budget=12 * 1024 * 1024):
    """spatial_heads: list of (N, C, H, W) logits (any float dtype); instance: (N, H, W) int;
    class_weight: (C,) f32.  Returns sum over heads of weighted-mean CE."""
    S = len(spatial_heads)
    N, C, H, W = spatial_heads[0].shape
    HW = H * W
    class_weight = jnp.asarray(class_weight, jnp.float32)

    # VMEM-budgeted lane tile: 2 buffers x S heads x C x in_bytes logits, plus double-buffered
    # targets / wpix / out rows and headroom for the (C, tp) f32 temporaries.
    in_bytes = jnp.dtype(spatial_heads[0].dtype).itemsize
    bytes_per_lane = 2 * S * C * in_bytes + 3 * 2 * 4 + 4 * C * 4
    budget_tp = max(128, (vmem_budget // bytes_per_lane) // 128 * 128)
    tp, HW_pad = _choose_tile(HW, min(tp_cap, budget_tp))
    num_p = HW_pad // tp

    heads = [h.reshape(N, C, HW) for h in spatial_heads]            # free reshape, native dtype
    tgt = instance.reshape(N, 1, HW).astype(jnp.int32)
    wpix_full = class_weight[instance].astype(jnp.float32)          # (N, H, W); also denominator
    wpix = wpix_full.reshape(N, 1, HW)

    if HW_pad != HW:
        pad = HW_pad - HW
        heads = [jnp.pad(h, ((0, 0), (0, 0), (0, pad))) for h in heads]
        tgt = jnp.pad(tgt, ((0, 0), (0, 0), (0, pad)))
        wpix = jnp.pad(wpix, ((0, 0), (0, 0), (0, pad)))            # zero weight masks pad pixels

    logit_spec = pl.BlockSpec((1, C, tp), lambda n, p: (n, 0, p))
    in_specs = [
        pl.BlockSpec((1, 1, tp), lambda n, p: (n, 0, p)),           # targets
        pl.BlockSpec((1, 1, tp), lambda n, p: (n, 0, p)),           # per-pixel class weights
    ] + [logit_spec] * S

    num_pix = pl.pallas_call(
        _make_spatial_kernel(S),
        out_shape=jax.ShapeDtypeStruct((N, 1, HW_pad), jnp.float32),
        grid=(N, num_p),
        in_specs=in_specs,
        out_specs=pl.BlockSpec((1, 1, tp), lambda n, p: (n, 0, p)),
        compiler_params=pltpu.CompilerParams(
            dimension_semantics=("parallel", "parallel"),
            vmem_limit_bytes=32 * 1024 * 1024),
    )(tgt, wpix, *heads)

    num = jnp.sum(num_pix)
    den = jnp.sum(wpix_full)                 # target-only denominator, plain JAX
    return num / den


# ---------------------------------------------------------------------------
# Unweighted cross-entropy for the label head (num_labels == 4), mean reduction.
# (N, L) is tiny — kept as a single small Pallas call.
# ---------------------------------------------------------------------------
def _label_ce_kernel(logits_ref, tgt_ref, out_ref):
    logits = logits_ref[...].astype(jnp.float32)   # (N, L)
    tgt = tgt_ref[...]                             # (N, 1) i32
    cls = jax.lax.broadcasted_iota(jnp.int32, logits.shape, 1)
    onehot = (cls == tgt).astype(jnp.float32)
    m = jnp.max(logits, axis=1, keepdims=True)
    lse = jnp.log(jnp.sum(jnp.exp(logits - m), axis=1, keepdims=True)) + m
    picked = jnp.sum(onehot * logits, axis=1, keepdims=True)
    out_ref[0, 0] = jnp.mean(lse - picked)


def label_ce(label_logits, label_target):
    """label_logits: (N, L) float, label_target: (N,) int."""
    N, L = label_logits.shape
    tgt = label_target.reshape(N, 1).astype(jnp.int32)
    out = pl.pallas_call(
        _label_ce_kernel,
        out_shape=jax.ShapeDtypeStruct((1, 1), jnp.float32),
        in_specs=[
            pl.BlockSpec(memory_space=pltpu.MemorySpace.VMEM),
            pl.BlockSpec(memory_space=pltpu.MemorySpace.VMEM),
        ],
        out_specs=pl.BlockSpec(memory_space=pltpu.MemorySpace.SMEM),
    )(label_logits, tgt)
    return out[0, 0]


# ---------------------------------------------------------------------------
# Module-equivalent wrapper (forward pass of Unetpploss).
# ---------------------------------------------------------------------------
def unetpp_loss(outputs, batch, lane_weight, loss_weight):
    spatial_loss = spatial_weighted_ce_sum(outputs["spatial"], batch["instance"], lane_weight)
    label_loss = label_ce(outputs["label"], batch["label"])
    loss = spatial_loss * loss_weight[0] + label_loss * loss_weight[1]
    loss_states = {"loss": loss, "spatial_loss": spatial_loss, "label_loss": label_loss}
    return loss, loss_states


if __name__ == "__main__":
    # Deterministic "opt" config (the module's only parameters).
    class Opt:
        pass
    opt = Opt()
    opt.lane_weight = [0.4, 1.0, 1.0, 1.0, 1.0]   # per-class weights for spatial CE
    opt.num_labels = 4                            # -> CrossEntropyLoss for label head
    opt.loss_weight = [1.0, 0.5]

    S, N, C, H, W = 4, 2, 5, 16, 16               # 4 deep-supervision heads
    L = opt.num_labels

    key = jax.random.PRNGKey(0)
    k1, k2, k3, k4 = jax.random.split(key, 4)
    spatial = jax.random.normal(k1, (S, N, C, H, W), jnp.float32)          # NCHW per head
    instance = jax.random.randint(k2, (N, H, W), 0, C, jnp.int32)
    label_logits = jax.random.normal(k3, (N, L), jnp.float32)
    label_target = jax.random.randint(k4, (N,), 0, L, jnp.int32)

    lane_w = jnp.asarray(opt.lane_weight, jnp.float32)

    outputs = {"spatial": [spatial[i] for i in range(S)], "label": label_logits}
    batch = {"instance": instance, "label": label_target}

    loss, states = unetpp_loss(outputs, batch, lane_w, opt.loss_weight)
    loss = jax.block_until_ready(loss)

    # Pure-JAX reference check.
    def ref_weighted_ce(logits_nchw, target, weight):
        l = jnp.moveaxis(logits_nchw, 1, -1)                       # (N,H,W,C)
        lse = jax.scipy.special.logsumexp(l, axis=-1)
        picked = jnp.take_along_axis(l, target[..., None], axis=-1)[..., 0]
        per = lse - picked
        w = weight[target]
        return jnp.sum(w * per) / jnp.sum(w)

    ref_spatial = sum(ref_weighted_ce(spatial[i], instance, lane_w) for i in range(S))
    lse = jax.scipy.special.logsumexp(label_logits, axis=-1)
    picked = jnp.take_along_axis(label_logits, label_target[:, None], axis=-1)[:, 0]
    ref_label = jnp.mean(lse - picked)
    ref_loss = ref_spatial * opt.loss_weight[0] + ref_label * opt.loss_weight[1]

    assert jnp.allclose(states["spatial_loss"], ref_spatial, rtol=1e-4, atol=1e-4)
    assert jnp.allclose(states["label_loss"], ref_label, rtol=1e-4, atol=1e-4)
    assert jnp.allclose(loss, ref_loss, rtol=1e-4, atol=1e-4)

    print("KERNEL_OK")
</pallas_src>

<mosaic_0001>
module attributes {stable_mosaic.version = 11 : i64} {
  func.func @kernel(%arg0: i32, %arg1: i32, %arg2: memref<1x1x256xi32, #tpu.memory_space<vmem>>, %arg3: memref<1x1x256xf32, #tpu.memory_space<vmem>>, %arg4: memref<1x5x256xf32, #tpu.memory_space<vmem>>, %arg5: memref<1x5x256xf32, #tpu.memory_space<vmem>>, %arg6: memref<1x5x256xf32, #tpu.memory_space<vmem>>, %arg7: memref<1x5x256xf32, #tpu.memory_space<vmem>>, %arg8: memref<1x1x256xf32, #tpu.memory_space<vmem>>) attributes {dimension_semantics = [#tpu.dimension_semantics<parallel>, #tpu.dimension_semantics<parallel>], iteration_bounds = array<i64: 2, 1>, scalar_prefetch = 0 : i64, scratch_operands = 0 : i64, tpu.core_type = #tpu.core_type<tc>, window_params = [{transform_indices = @transform_0, window_bounds = array<i64: 1, 1, 256>}, {transform_indices = @transform_1, window_bounds = array<i64: 1, 1, 256>}, {transform_indices = @transform_2, window_bounds = array<i64: 1, 5, 256>}, {transform_indices = @transform_3, window_bounds = array<i64: 1, 5, 256>}, {transform_indices = @transform_4, window_bounds = array<i64: 1, 5, 256>}, {transform_indices = @transform_5, window_bounds = array<i64: 1, 5, 256>}, {transform_indices = @transform_6, window_bounds = array<i64: 1, 1, 256>}]} {
    %c0 = arith.constant 0 : index
    %c0_0 = arith.constant 0 : index
    %c0_1 = arith.constant 0 : index
    %0 = vector.load %arg2[%c0, %c0_0, %c0_1] : memref<1x1x256xi32, #tpu.memory_space<vmem>>, vector<1x1x256xi32>
    %1 = vector.shape_cast %0 : vector<1x1x256xi32> to vector<1x256xi32>
    %c0_2 = arith.constant 0 : index
    %c0_3 = arith.constant 0 : index
    %c0_4 = arith.constant 0 : index
    %2 = vector.load %arg3[%c0_2, %c0_3, %c0_4] : memref<1x1x256xf32, #tpu.memory_space<vmem>>, vector<1x1x256xf32>
    %3 = vector.shape_cast %2 : vector<1x1x256xf32> to vector<1x256xf32>
    %4 = tpu.iota {dimensions = array<i32: 0>} : vector<5x256xi32>
    %5 = vector.broadcast %1 : vector<1x256xi32> to vector<5x256xi32>
    %6 = arith.cmpi eq, %4, %5 : vector<5x256xi32>
    %7 = arith.extui %6 : vector<5x256xi1> to vector<5x256xi32>
    %8 = arith.sitofp %7 : vector<5x256xi32> to vector<5x256xf32>
    %cst = arith.constant 1.000000e+00 : f32
    %9 = vector.broadcast %cst : f32 to vector<1x5xf32>
    %cst_5 = arith.constant 0.000000e+00 : f32
    %10 = vector.broadcast %cst_5 : f32 to vector<1x256xf32>
    %cst_6 = arith.constant 0.000000e+00 : f32
    %11 = vector.broadcast %cst_6 : f32 to vector<5x256xf32>
    %c0_7 = arith.constant 0 : index
    %c0_8 = arith.constant 0 : index
    %c0_9 = arith.constant 0 : index
    %12 = vector.load %arg4[%c0_7, %c0_8, %c0_9] : memref<1x5x256xf32, #tpu.memory_space<vmem>>, vector<1x5x256xf32>
    %13 = vector.shape_cast %12 : vector<1x5x256xf32> to vector<5x256xf32>
    %cst_10 = arith.constant dense<0xFF800000> : vector<256xf32>
    %14 = vector.multi_reduction <maximumf>, %13, %cst_10 [0] : vector<5x256xf32> to vector<256xf32>
    %15 = vector.shape_cast %14 : vector<256xf32> to vector<1x256xf32>
    %16 = vector.broadcast %15 : vector<1x256xf32> to vector<5x256xf32>
    %17 = arith.subf %13, %16 : vector<5x256xf32>
    %18 = math.exp %17 : vector<5x256xf32>
    %cst_11 = arith.constant dense<0.000000e+00> : vector<1x256xf32>
    %19 = tpu.matmul %9, %18, %cst_11 {dimension_numbers = #tpu.dot_dimension_numbers<[1], [0], [0], [1], [0, 0, 1, 1], [], []>} : vector<1x5xf32>, vector<5x256xf32>, vector<1x256xf32> -> vector<1x256xf32>
    %20 = math.log %19 : vector<1x256xf32>
    %21 = arith.addf %10, %20 : vector<1x256xf32>
    %22 = arith.addf %21, %15 : vector<1x256xf32>
    %23 = arith.addf %11, %13 : vector<5x256xf32>
    %c0_12 = arith.constant 0 : index
    %c0_13 = arith.constant 0 : index
    %c0_14 = arith.constant 0 : index
    %24 = vector.load %arg5[%c0_12, %c0_13, %c0_14] : memref<1x5x256xf32, #tpu.memory_space<vmem>>, vector<1x5x256xf32>
    %25 = vector.shape_cast %24 : vector<1x5x256xf32> to vector<5x256xf32>
    %cst_15 = arith.constant dense<0xFF800000> : vector<256xf32>
    %26 = vector.multi_reduction <maximumf>, %25, %cst_15 [0] : vector<5x256xf32> to vector<256xf32>
    %27 = vector.shape_cast %26 : vector<256xf32> to vector<1x256xf32>
    %28 = vector.broadcast %27 : vector<1x256xf32> to vector<5x256xf32>
    %29 = arith.subf %25, %28 : vector<5x256xf32>
    %30 = math.exp %29 : vector<5x256xf32>
    %cst_16 = arith.constant dense<0.000000e+00> : vector<1x256xf32>
    %31 = tpu.matmul %9, %30, %cst_16 {dimension_numbers = #tpu.dot_dimension_numbers<[1], [0], [0], [1], [0, 0, 1, 1], [], []>} : vector<1x5xf32>, vector<5x256xf32>, vector<1x256xf32> -> vector<1x256xf32>
    %32 = math.log %31 : vector<1x256xf32>
    %33 = arith.addf %22, %32 : vector<1x256xf32>
    %34 = arith.addf %33, %27 : vector<1x256xf32>
    %35 = arith.addf %23, %25 : vector<5x256xf32>
    %c0_17 = arith.constant 0 : index
    %c0_18 = arith.constant 0 : index
    %c0_19 = arith.constant 0 : index
    %36 = vector.load %arg6[%c0_17, %c0_18, %c0_19] : memref<1x5x256xf32, #tpu.memory_space<vmem>>, vector<1x5x256xf32>
    %37 = vector.shape_cast %36 : vector<1x5x256xf32> to vector<5x256xf32>
    %cst_20 = arith.constant dense<0xFF800000> : vector<256xf32>
    %38 = vector.multi_reduction <maximumf>, %37, %cst_20 [0] : vector<5x256xf32> to vector<256xf32>
    %39 = vector.shape_cast %38 : vector<256xf32> to vector<1x256xf32>
    %40 = vector.broadcast %39 : vector<1x256xf32> to vector<5x256xf32>
    %41 = arith.subf %37, %40 : vector<5x256xf32>
    %42 = math.exp %41 : vector<5x256xf32>
    %cst_21 = arith.constant dense<0.000000e+00> : vector<1x256xf32>
    %43 = tpu.matmul %9, %42, %cst_21 {dimension_numbers = #tpu.dot_dimension_numbers<[1], [0], [0], [1], [0, 0, 1, 1], [], []>} : vector<1x5xf32>, vector<5x256xf32>, vector<1x256xf32> -> vector<1x256xf32>
    %44 = math.log %43 : vector<1x256xf32>
    %45 = arith.addf %34, %44 : vector<1x256xf32>
    %46 = arith.addf %45, %39 : vector<1x256xf32>
    %47 = arith.addf %35, %37 : vector<5x256xf32>
    %c0_22 = arith.constant 0 : index
    %c0_23 = arith.constant 0 : index
    %c0_24 = arith.constant 0 : index
    %48 = vector.load %arg7[%c0_22, %c0_23, %c0_24] : memref<1x5x256xf32, #tpu.memory_space<vmem>>, vector<1x5x256xf32>
    %49 = vector.shape_cast %48 : vector<1x5x256xf32> to vector<5x256xf32>
    %cst_25 = arith.constant dense<0xFF800000> : vector<256xf32>
    %50 = vector.multi_reduction <maximumf>, %49, %cst_25 [0] : vector<5x256xf32> to vector<256xf32>
    %51 = vector.shape_cast %50 : vector<256xf32> to vector<1x256xf32>
    %52 = vector.broadcast %51 : vector<1x256xf32> to vector<5x256xf32>
    %53 = arith.subf %49, %52 : vector<5x256xf32>
    %54 = math.exp %53 : vector<5x256xf32>
    %cst_26 = arith.constant dense<0.000000e+00> : vector<1x256xf32>
    %55 = tpu.matmul %9, %54, %cst_26 {dimension_numbers = #tpu.dot_dimension_numbers<[1], [0], [0], [1], [0, 0, 1, 1], [], []>} : vector<1x5xf32>, vector<5x256xf32>, vector<1x256xf32> -> vector<1x256xf32>
    %56 = math.log %55 : vector<1x256xf32>
    %57 = arith.addf %46, %56 : vector<1x256xf32>
    %58 = arith.addf %57, %51 : vector<1x256xf32>
    %59 = arith.addf %47, %49 : vector<5x256xf32>
    %60 = arith.mulf %8, %59 : vector<5x256xf32>
    %cst_27 = arith.constant dense<0.000000e+00> : vector<1x256xf32>
    %61 = tpu.matmul %9, %60, %cst_27 {dimension_numbers = #tpu.dot_dimension_numbers<[1], [0], [0], [1], [0, 0, 1, 1], [], []>} : vector<1x5xf32>, vector<5x256xf32>, vector<1x256xf32> -> vector<1x256xf32>
    %62 = arith.subf %58, %61 : vector<1x256xf32>
    %63 = arith.mulf %3, %62 : vector<1x256xf32>
    %64 = vector.shape_cast %63 : vector<1x256xf32> to vector<1x1x256xf32>
    %c0_28 = arith.constant 0 : index
    %c0_29 = arith.constant 0 : index
    %c0_30 = arith.constant 0 : index
    %65 = vector.load %arg8[%c0_28, %c0_29, %c0_30] : memref<1x1x256xf32, #tpu.memory_space<vmem>>, vector<1x1x256xf32>
    tpu.vector_store %arg8[%c0_28, %c0_29, %c0_30], %64 {strides = array<i32>} : memref<1x1x256xf32, #tpu.memory_space<vmem>>, vector<1x1x256xf32>,
    return
  }
  func.func @transform_0(%arg0: i32, %arg1: i32) -> (i32, i32, i32) {
    %c0_i32 = arith.constant 0 : i32
    %c0_i32_0 = arith.constant 0 : i32
    return %arg0, %c0_i32, %arg1 : i32, i32, i32
  }
  func.func @transform_1(%arg0: i32, %arg1: i32) -> (i32, i32, i32) {
    %c0_i32 = arith.constant 0 : i32
    %c0_i32_0 = arith.constant 0 : i32
    return %arg0, %c0_i32, %arg1 : i32, i32, i32
  }
  func.func @transform_2(%arg0: i32, %arg1: i32) -> (i32, i32, i32) {
    %c0_i32 = arith.constant 0 : i32
    %c0_i32_0 = arith.constant 0 : i32
    return %arg0, %c0_i32, %arg1 : i32, i32, i32
  }
  func.func @transform_3(%arg0: i32, %arg1: i32) -> (i32, i32, i32) {
    %c0_i32 = arith.constant 0 : i32
    %c0_i32_0 = arith.constant 0 : i32
    return %arg0, %c0_i32, %arg1 : i32, i32, i32
  }
  func.func @transform_4(%arg0: i32, %arg1: i32) -> (i32, i32, i32) {
    %c0_i32 = arith.constant 0 : i32
    %c0_i32_0 = arith.constant 0 : i32
    return %arg0, %c0_i32, %arg1 : i32, i32, i32
  }
  func.func @transform_5(%arg0: i32, %arg1: i32) -> (i32, i32, i32) {
    %c0_i32 = arith.constant 0 : i32
    %c0_i32_0 = arith.constant 0 : i32
    return %arg0, %c0_i32, %arg1 : i32, i32, i32
  }
  func.func @transform_6(%arg0: i32, %arg1: i32) -> (i32, i32, i32) {
    %c0_i32 = arith.constant 0 : i32
    %c0_i32_0 = arith.constant 0 : i32
    return %arg0, %c0_i32, %arg1 : i32, i32, i32
  }
}

</mosaic_0001>

<bundles_post_ra>
// kernel: tpu_custom_call.1
= control target key start
LH: loop header
LB: loop body
LE: loop exit
PB: predicated region body
PF: predicated region fallthrough
CT: control target
= control target key end

     0   :  { %11 = vsyncpa [#allocation3], 0  ;;  %s1696_s0 = inlined_call_operand.vmem [shape: s32[2,1,256], index: 0, kind: input, shape index: {}]   ;;  %s1697_s1 = inlined_call_operand.vmem [shape: f32[2,1,256], index: 1, kind: input, shape index: {}]   ;;  %s1698_s2 = inlined_call_operand.vmem [shape: f32[2,5,256], index: 2, kind: input, shape index: {}]   ;;  %s1699_s3 = inlined_call_operand.vmem [shape: f32[2,5,256], index: 3, kind: input, shape index: {}]   ;;  %s1700_s4 = inlined_call_operand.vmem [shape: f32[2,5,256], index: 4, kind: input, shape index: {}]   ;;  %s1701_s5 = inlined_call_operand.vmem [shape: f32[2,5,256], index: 5, kind: input, shape index: {}]   ;;  %s1702_s6 = inlined_call_operand.hbm [shape: f32[2,1,256], index: 6, kind: output, shape index: {}]  }
   0x1   :  { %13 = vsyncpa [#allocation3 + $0x1], 0  ;;  %s1448_s21 = smov 0   ;;  %s1450_s22 = smov 0  }
   0x2   :  { %s1452_s23 = smov 0   ;;  %s1454_s24 = smov 0  }
   0x3   :  { %s1456_s25 = smov 0   ;;  %s1458_s26 = smov 0  }
   0x4 LB: > { %s1196_s27 = sadd.s32 4294967295, %s1407_s26   ;;  %s1197_s28 = sadd.s32 4294967294, %s1407_s26   ;;  %s1407_s26 = sphi %s1458_s26, %s19_s26   ;;  %s1403_s25 = sphi %s1456_s25, %s1709_s25   ;;  %s1399_s24 = sphi %s1454_s24, %s1708_s24   ;;  %s1395_s23 = sphi %s1452_s23, %s1707_s23   ;;  %s1391_s22 = sphi %s1450_s22, %s1706_s22   ;;  %s1387_s21 = sphi %s1448_s21, %s1705_s21  }
   0x5   : > { %s31_s29 = sadd.s32 1, %s1403_s25  ;;  %s208_s30 = sadd.s32 1, %s1395_s23 }
   0x6   : > { %p33_p0 = scmp.ge.s32.totalorder %s31_s29, 2  ;;  %p218_p1 = scmp.ne.s32.totalorder %s1395_s23, %s1391_s22 }
   0x7   : > { %p219_p2 = scmp.eq.s32.totalorder %s1196_s27, 1  ;;  %p224_p3 = scmp.ne.s32.totalorder %s1391_s22, %s1387_s21 }
   0x8   : > { %s1711_s29 = smov (%p33_p0, %s31_s29), 0  ;;  %p225_p5 = scmp.eq.s32.totalorder %s1197_s28, 1 }
   0x9   : > { %p1488_p4 = por %p219_p2, %p218_p1  ;;  %s203_s8 = ssub.s32 %s1403_s25, %s1711_s29 }
   0xa   : > { %p1200_p6 = scmp.ge.s32.totalorder %s1407_s26, 1  ;;  %p206_p7 = scmp.eq.s32.totalorder %s203_s8, 0 }
   0xb   : > { %p1495_p8 = por %p225_p5, %p224_p3  ;;  %p319_p9 = scmp.lt.s32.totalorder %s1407_s26, 3 }
   0xc   : > { %s1501_s10 = scalar_select %p206_p7, %s1395_s23, %s208_s30  }
   0xd   : > { %p320_p10 = pnand %p1200_p6, %p319_p9 }
   0xe   : > { %p397_p11 = scmp.lt.s32.totalorder (!%p320_p10), %s1399_s24, 1  ;;  %v1409_v0 = vmov (!%p320_p10), 0.0   ;;  %v457_v1 = vlaneseq (!%p320_p10)  ;;  %vm475_vm0 = vcmask (!%p320_p10), 1044480   ;;  %vm496_vm3 = vcmask (!%p320_p10), 39936   ;;  %s393_s16 = sand.u32 (!%p320_p10), 1, %s1391_s22  }
   0xf   : > { %323 = sbr.rel (%p320_p10) target bundleno = 326 (0x146), region = 44  ;;  %570 = vmatprep.mubr.f32.mxu0 (!%p320_p10), %v1409_v0  ;;  %679 = vmatprep.mubr.f32.mxu1 (!%p320_p10), %v1409_v0  ;;  %s1201_s17 = sshll.u32 (!%p320_p10), %s393_s16, 1 }
  0x10   : > { %v1510_v2 = vshrl.u32 (!%p320_p10), %v457_v1, 7  ;;  %s395_s28 = scalar_lea.vmem (!%p320_p10), [#allocation2], %s1201_s17  ;;  %vm1016_vm4 = vcmp.lt.s32.totalorder (!%p320_p10), %v457_v1, 256 }
  0x11   : > { %s1036_s30 = sshll.u32 (!%p320_p10), %s395_s28, 4  ;;  %s1651_s30 = int_to_ptr.vmem [resolvable:$true] %s1036_s30 }
  0x12   : > { %v465_v10 = vsub.s32 (!%p320_p10), 1, %v1510_v2 }
  0x16   : > { %s1507_s11 = scalar_select %p397_p11, %s1399_s24, 1 }
  0x18   : > { %s1234_s12 = sshll.u32 %s1507_s11, 4 }
  0x19   : > { %s422_s15 = scalar_lea.vmem %s1698_s2, %s1234_s12  ;;  %s442_s18 = scalar_lea.vmem %s1700_s4, %s1234_s12 }
  0x1a   : > { %s452_s27 = scalar_lea.vmem %s1701_s5, %s1234_s12  ;;  %v1522_v3 = vld [vmem:[%s422_s15] sm:$0x1f]  ;;  %v1524_v4 = vld [vmem:[%s422_s15 + $0x8] sm:$0x1f]  ;;  %s432_s8 = scalar_lea.vmem %s1699_s3, %s1234_s12 }
  0x1b   : > { %v1526_v5 = vld [vmem:[%s442_s18] sm:$0x1f]  ;;  %v476_v6 = vsel %vm475_vm0, %v1522_v3, -inf  ;;  %v483_v7 = vsel %vm475_vm0, %v1524_v4, -inf  ;;  %v1535_v8 = vld [vmem:[%s442_s18 + $0x8] sm:$0x1f] }
  0x1c   : > { %v698_v9 = vsel %vm475_vm0, %v1526_v5, -inf  ;;  %v477_v11 = vrot.slane %v476_v6, 4  ;;  %v484_v12 = vrot.slane %v483_v7, 4  ;;  %v705_v14 = vsel %vm475_vm0, %v1535_v8, -inf  ;;  %v1542_v15 = vld [vmem:[%s452_s27] sm:$0x1f] }
  0x1d   : > { %v699_v13 = vrot.slane %v698_v9, 4  ;;  %v706_v16 = vrot.slane %v705_v14, 4  ;;  %v1544_v17 = vld [vmem:[%s452_s27 + $0x8] sm:$0x1f]  ;;  %v807_v18 = vsel %vm475_vm0, %v1542_v15, -inf  ;;  %s1202_s12 = sshll.u32 %s1507_s11, 1 }
  0x1e   : > { %v1548_v19 = vld [vmem:[%s432_s8] sm:$0x1f]  ;;  %v478_v20 = vmax.f32 %v476_v6, %v477_v11  ;;  %v485_v21 = vmax.f32 %v483_v7, %v484_v12  ;;  %v808_v23 = vrot.slane %v807_v18, 4  ;;  %v1550_v24 = vld [vmem:[%s432_s8 + $0x8] sm:$0x1f]  ;;  %v814_v26 = vsel %vm475_vm0, %v1544_v17, -inf  ;;  %s403_s15 = scalar_lea.vmem %s1696_s0, %s1202_s12  ;;  %s412_s20 = scalar_lea.vmem %s1697_s1, %s1202_s12 }
  0x1f   : > { %v700_v22 = vmax.f32 %v698_v9, %v699_v13  ;;  %v707_v25 = vmax.f32 %v705_v14, %v706_v16  ;;  %v589_v27 = vsel %vm475_vm0, %v1548_v19, -inf  ;;  %v596_v28 = vsel %vm475_vm0, %v1550_v24, -inf  ;;  %s1238_s27 = sshll.u32 %s1399_s24, 5  ;;  %s1020_s11 = scalar_lea.sflag [#allocation3], %s393_s16 }
  0x20   : > { %v479_v29 = vrot.slane %v478_v20, 2  ;;  %v486_v30 = vrot.slane %v485_v21, 2  ;;  %v809_v32 = vmax.f32 %v807_v18, %v808_v23  ;;  %v815_v34 = vrot.slane %v814_v26, 4  ;;  %v455_v23 = vld [vmem:[%s403_s15] sm:$0x3]  ;;  %s1649_s14 = scalar_lea.hbm %s1702_s6, %s1238_s27  ;;  %s1329_s12 = scalar_lea.vmem %s1651_s30, 32 }
  0x21   : > { %v701_v31 = vrot.slane %v700_v22, 2  ;;  %v708_v33 = vrot.slane %v707_v25, 2  ;;  %v590_v35 = vrot.slane %v589_v27, 4  ;;  %v597_v36 = vrot.slane %v596_v28, 4  ;;  %p1330_p12 = scmp.ne.s32.totalorder %s1651_s30, %s1329_s12  ;;  %s1412_s24 = smov [#allocation2]  }
  0x22   : > { %v480_v37 = vmax.f32 %v478_v20, %v479_v29  ;;  %v487_v38 = vmax.f32 %v485_v21, %v486_v30  ;;  %v810_v40 = vrot.slane %v809_v32, 2  ;;  %v816_v42 = vmax.f32 %v814_v26, %v815_v34  ;;  %s1333_s15 = sshll.u32 %s1412_s24, 4  ;;  %s1334_s15 = int_to_ptr.vmem [resolvable:$false] %s1333_s15 }
  0x23   : > { %v702_v39 = vmax.f32 %v700_v22, %v701_v31  ;;  %v709_v41 = vmax.f32 %v707_v25, %v708_v33  ;;  %v591_v43 = vmax.f32 %v589_v27, %v590_v35  ;;  %v598_v44 = vmax.f32 %v596_v28, %v597_v36  ;;  %p1331_p13 = pnand %p1330_p12, %p1488_p4  ;;  %s1335_s17 = scalar_lea.vmem %s1334_s15, 64 }
  0x24   : > { %v481_v45 = vrot.slane %v480_v37, 1  ;;  %v488_v46 = vrot.slane %v487_v38, 1  ;;  %v811_v48 = vmax.f32 %v809_v32, %v810_v40  ;;  %v817_v50 = vrot.slane %v816_v42, 2  ;;  %p1336_p1 = scmp.lt.s32.totalorder %s1651_s30, %s1334_s15  ;;  %p1337_p2 = scmp.lt.s32.totalorder %s1335_s17, %s1329_s12 }
  0x25   : > { %v703_v47 = vrot.slane %v702_v39, 1  ;;  %v710_v49 = vrot.slane %v709_v41, 1  ;;  %v592_v51 = vrot.slane %v591_v43, 2  ;;  %v599_v52 = vrot.slane %v598_v44, 2  ;;  %p1332_p0 = pneg %p1331_p13 }
  0x26   : > { %v1559_v53 = vmax.f32 %v480_v37, %v481_v45  ;;  %v1561_v54 = vmax.f32 %v487_v38, %v488_v46  ;;  %v812_v56 = vrot.slane %v811_v48, 1  ;;  %v818_v58 = vmax.f32 %v816_v42, %v817_v50  ;;  %p1338_p3 = por %p1337_p2, %p1336_p1 }
  0x27   : > { %v1563_v55 = vmax.f32 %v702_v39, %v703_v47  ;;  %v1565_v57 = vmax.f32 %v709_v41, %v710_v49  ;;  %v593_v59 = vmax.f32 %v591_v43, %v592_v51  ;;  %v600_v60 = vmax.f32 %v598_v44, %v599_v52 }
  0x28   : > { %v490_v61 = vsub.f32 %v1522_v3, %v1559_v53  ;;  %v491_v62 = vsub.f32 %v1524_v4, %v1561_v54  ;;  %v1573_v6 = vmax.f32 %v811_v48, %v812_v56  ;;  %v819_v9 = vrot.slane %v818_v58, 1  ;;  %p1339_p5 = pnand %p1338_p3, %p1332_p0 }
  0x29   : > { %v712_v63 = vsub.f32 %v1526_v5, %v1563_v55  ;;  %v713_v7 = vsub.f32 %v1535_v8, %v1565_v57  ;;  %v594_v11 = vrot.slane %v593_v59, 1  ;;  %v601_v12 = vrot.slane %v600_v60, 1 }
  0x2a   : > { %v492_v13 = vmul.f32 1.442695, %v490_v61  ;;  %v494_v14 = vmul.f32 1.442695, %v491_v62  ;;  %v1582_v20 = vmax.f32 %v818_v58, %v819_v9  ;;  %v821_v25 = vsub.f32 %v1542_v15, %v1573_v6 }
  0x2b   : > { %v714_v16 = vmul.f32 1.442695, %v712_v63  ;;  %v716_v18 = vmul.f32 1.442695, %v713_v7  ;;  %v1584_v21 = vmax.f32 %v593_v59, %v594_v11  ;;  %v1586_v22 = vmax.f32 %v600_v60, %v601_v12 }
  0x2c   : > { %1297 = vpow2.f32 %v492_v13  ;;  %v461_v26 = vsub.s32 0, %v1510_v2  ;;  %v822_v27 = vsub.f32 %v1544_v17, %v1582_v20  ;;  %v466_v30 = vrot.slane %v455_v23, %v465_v10 }
  0x2d   : > { %1299 = vpow2.f32 %v494_v14  ;;  %v603_v28 = vsub.f32 %v1548_v19, %v1584_v21  ;;  %v604_v29 = vsub.f32 %v1550_v24, %v1586_v22  ;;  %v695_v31 = vadd.f32 %v1550_v24, %v1524_v4 }
  0x2e   : > { %1301 = vpow2.f32 %v714_v16  ;;  %v825_v32 = vmul.f32 1.442695, %v822_v27  ;;  %v823_v35 = vmul.f32 1.442695, %v821_v25  ;;  %v462_v37 = vrot.slane %v455_v23, %v461_v26 }
  0x2f   : > { %1303 = vpow2.f32 %v716_v18  ;;  %v605_v33 = vmul.f32 1.442695, %v603_v28  ;;  %v607_v34 = vmul.f32 1.442695, %v604_v29  ;;  %v804_v36 = vadd.f32 %v1535_v8, %v695_v31 }
  0x30   : > { %1305 = vpow2.f32 %v825_v32  ;;  %v694_v38 = vadd.f32 %v1548_v19, %v1522_v3  ;;  %vm468_vm1 = vcmp.eq.s32.totalorder %v1510_v2, %v466_v30  ;;  %vm467_vm2 = vcmp.eq.s32.totalorder %v1510_v2, %v462_v37 }
  0x31   : > { %1307 = vpow2.f32 %v605_v33  ;;  %v913_v4 = vadd.f32 %v1544_v17, %v804_v36  ;;  %v1213_v24 = vsel %vm468_vm1, 1.0, %v1409_v0  ;;  %v1212_v19 = vsel %vm467_vm2, 1.0, %v1409_v0 }
  0x32   : > { %1309 = vpow2.f32 %v607_v34  ;;  %v803_v10 = vadd.f32 %v1526_v5, %v694_v38  ;;  %v1410_v5 = vmov 1.0  }
  0x33   : > { %1311 = vpow2.f32 %v823_v35  ;;  %v915_v3 = vmul.f32 %v1213_v24, %v913_v4 }
  0x34   : > { %v912_v40 = vadd.f32 %v1542_v15, %v803_v10 }
  0x36   : > { %v1298_v39 = vpop.eup %1297  ;;  %v914_v15 = vmul.f32 %v1212_v19, %v912_v40 }
  0x37   : > { %v1300_v8 = vpop.eup %1299 }
  0x38   : > { %v1302_v41 = vpop.eup %1301  ;;  %1214 = vmatprep.subr.msk.mxu0 %vm475_vm0, %v1300_v8 }
  0x39   : > { %v1304_v42 = vpop.eup %1303  ;;  %1215 = vmatpush1.msk.msra.mxu0 %vm475_vm0, %v1298_v39 }
  0x3a   : > { %1216 = vmatmul.mubr.msk.f32.vlgmr.msra.gmra.mrb[0].mxu0 %vm496_vm3, %v1410_v5  ;;  %1220 = vmatprep.subr.msk.mxu0 %vm475_vm0, %v1304_v42  ;;  %v1306_v17 = vpop.eup %1305 }
  0x3b   : > { %1221 = vmatpush1.msk.msra.mxu0 %vm475_vm0, %v1302_v41  ;;  %788 = vmatprep.mubr.f32.mxu0 %v1409_v0  ;;  %v1308_v43 = vpop.eup %1307 }
  0x3c   : > { %1226 = vmatprep.subr.msk.mxu0 %vm475_vm0, %v915_v3  ;;  %v1310_v44 = vpop.eup %1309 }
  0x3d   : > { %v1312_v45 = vpop.eup %1311  ;;  %1217 = vmatprep.subr.msk.mxu1 %vm475_vm0, %v1310_v44 }
  0x3e   : > { %1222 = vmatmul.mubr.msk.f32.vlgmr.msra.gmra.mrb[2].mxu0 %vm496_vm3, %v1410_v5  ;;  %1218 = vmatpush1.msk.msra.mxu1 %vm475_vm0, %v1308_v43 }
  0x3f   : > { %1227 = vmatpush1.msk.msra.mxu0 %vm475_vm0, %v914_v15  ;;  %1219 = vmatmul.mubr.msk.f32.vlgmr.msra.gmra.mrb[0].mxu1 %vm496_vm3, %v1410_v5 }
  0x40   : > { %1223 = vmatprep.subr.msk.mxu1 %vm475_vm0, %v1306_v17  ;;  %897 = vmatprep.mubr.f32.mxu1 %v1409_v0 }
  0x41   : > { %1224 = vmatpush1.msk.msra.mxu1 %vm475_vm0, %v1312_v45  ;;  %986 = vmatprep.mubr.f32.mxu0 %v1409_v0 }
  0x42   : > { %1228 = vmatmul.mubr.msk.f32.vlgmr.msra.gmra.mrb[4].mxu0 %vm496_vm3, %v1410_v5 }
  0x43   : > { %1225 = vmatmul.mubr.msk.f32.vlgmr.msra.gmra.mrb[2].mxu1 %vm496_vm3, %v1410_v5 }
 0x10d   : > { %v572_v46 = vpop.f32.mrb[0].mxu0 }
 0x10e   : > { %1313 = vlog2.f32 %v572_v46  ;;  %v574_v47 = vpop.f32.mrb[1].mxu0 }
 0x10f   : > { %1315 = vlog2.f32 %v574_v47 }
 0x111   : > { %v790_v48 = vpop.f32.mrb[2].mxu0 }
 0x112   : > { %1317 = vlog2.f32 %v790_v48  ;;  %v792_v49 = vpop.f32.mrb[3].mxu0  ;;  %v681_v50 = vpop.f32.mrb[0].mxu1 }
 0x113   : > { %1319 = vlog2.f32 %v792_v49  ;;  %v683_v51 = vpop.f32.mrb[1].mxu1 }
 0x114   : > { %1321 = vlog2.f32 %v681_v50 }
 0x115   : > { %1323 = vlog2.f32 %v683_v51  ;;  %v988_v52 = vpop.f32.mrb[4].mxu0 }
 0x116   : > { %v899_v56 = vpop.f32.mrb[2].mxu1  ;;  %v990_v58 = vpop.f32.mrb[5].mxu0 }
 0x117   : > { %1325 = vlog2.f32 %v899_v56  ;;  %v901_v59 = vpop.f32.mrb[3].mxu1 }
 0x118   : > { %v1314_v0 = vpop.eup %1313  ;;  %1327 = vlog2.f32 %v901_v59 }
 0x119   : > { %v1316_v60 = vpop.eup %1315  ;;  %v578_v61 = vmul.f32 0.6931472, %v1314_v0 }
 0x11a   : > { %v580_v62 = vmul.f32 0.6931472, %v1316_v60 }
 0x11b   : > { %v583_v9 = vadd.f32 %v578_v61, %v1559_v53 }
 0x11c   : > { %v1318_v63 = vpop.eup %1317  ;;  %v584_v12 = vadd.f32 %v580_v62, %v1561_v54  ;;  %v1411_v54 = vmov 1966171168  }
 0x11d   : > { %v1320_v7 = vpop.eup %1319  ;;  %v796_v23 = vmul.f32 0.6931472, %v1318_v63  ;;  %v999_v34 = vunpack.c.l.s4 %v1411_v54 }
 0x11e   : > { %v1322_v11 = vpop.eup %1321  ;;  %v798_v27 = vmul.f32 0.6931472, %v1320_v7 }
 0x11f   : > { %v1324_v13 = vpop.eup %1323  ;;  %v687_v14 = vmul.f32 0.6931472, %v1322_v11  ;;  %v1000_v10 = vunpack.c.0.s8 %v999_v34 }
 0x120   : > { %v689_v16 = vmul.f32 0.6931472, %v1324_v13 }
 0x121   : > { %v690_v18 = vadd.f32 %v687_v14, %v583_v9  ;;  %v1326_v25 = vpop.eup %1325  ;;  %v1003_v39 = vsub.s32 %v1000_v10, %v1510_v2 }
 0x122   : > { %v691_v26 = vadd.f32 %v689_v16, %v584_v12  ;;  %v1328_v28 = vpop.eup %1327  ;;  %v905_v32 = vmul.f32 0.6931472, %v1326_v25 }
 0x123   : > { %v692_v29 = vadd.f32 %v690_v18, %v1584_v21  ;;  %v907_v33 = vmul.f32 0.6931472, %v1328_v28 }
 0x124   : > { %v693_v30 = vadd.f32 %v691_v26, %v1586_v22 }
 0x125   : > { %v799_v31 = vadd.f32 %v796_v23, %v692_v29 }
 0x126   : > { %v800_v53 = vadd.f32 %v798_v27, %v693_v30 }
 0x127   : > { %v801_v35 = vadd.f32 %v799_v31, %v1563_v55 }
 0x128   : > { %v802_v36 = vadd.f32 %v800_v53, %v1565_v57  ;;  %v456_v57 = vld [vmem:[%s412_s20] sm:$0x3] }
 0x129   : > { %v908_v37 = vadd.f32 %v905_v32, %v801_v35 }
 0x12a   : > { %v909_v38 = vadd.f32 %v907_v33, %v802_v36 }
 0x12b   : > { %v910_v21 = vadd.f32 %v908_v37, %v1573_v6 }
 0x12c   : > { %v911_v22 = vadd.f32 %v909_v38, %v1582_v20 }
 0x12d   : > { %v993_v4 = vsub.f32 %v910_v21, %v988_v52 }
 0x12e   : > { %v994_v24 = vsub.f32 %v911_v22, %v990_v58 }
 0x130   : > { %v997_v8 = vcombine.low %v993_v4, %v994_v24 }
 0x132   : > { %v1004_v55 = vrot.slane %v997_v8, %v1003_v39 }
 0x134   : > { %v1011_v6 = vrot.slane %v1004_v55, %v1003_v39 }
 0x136   : > { %v1013_v20 = vmul.f32 %v1011_v6, %v456_v57 }
 0x138   : > { %1018 = vst.msk [vmem:[%s395_s28] sm:$0x3] %vm1016_vm4, %v1013_v20 }
 0x139   : > { %1342 = shalt.err (!%p1339_p5)
}
 0x13a   : > { %s1343_s16 = scalar_lea.hbm %s1649_s14, 32  ;;  %s1347_s20 = scalar_lea.hbm %s1702_s6, 64 }
 0x13b   : > { %p1344_p6 = scmp.ne.s32.totalorder %s1649_s14, %s1343_s16  ;;  %p1348_p10 = scmp.lt.u32.totalorder %s1649_s14, %s1702_s6 }
 0x13c   : > { %p1349_p11 = scmp.lt.u32.totalorder %s1347_s20, %s1343_s16  ;;  %p1351_p13 = scmp.lt.u32.totalorder %s1343_s16, %s1649_s14 }
 0x13d   : > { %p1345_p7 = pnand %p1344_p6, %p1488_p4 }
 0x13e   : > { %p1350_p12 = por %p1349_p11, %p1348_p10 }
 0x13f   : > { %p1346_p9 = pneg %p1345_p7 }
 0x140   : > { %p1352_p0 = por %p1351_p13, %p1350_p12 }
 0x142   : > { %p1353_p1 = pnand %p1352_p0, %p1346_p9 }
 0x144   : > { %1356 = shalt.err (!%p1353_p1)
}
 0x145   : > { %1239 = dma.vmem_to_hbm [thread:$0]  (%p1488_p4), %s1651_s30, 32, %s1649_s14, %s1020_s11  }
 0x146 PF: > { %p1245_p2 = scmp.ge.s32.totalorder %s1407_s26, 2  ;;  %s1048_s8 = sand.u32 1, %s1387_s21  }
 0x147   : > { %s1049_s13 = scalar_lea.sflag [#allocation3], %s1048_s8 }
 0x148   : > { %p1242_p3 = pnand %p1245_p2, %p1495_p8 }
 0x14a   : > { %1382 = dma.done.wait (!%p1242_p3), %s1049_s13, 32  }
 0x14b   : > { %1384 = vsyncadd (!%p1242_p3), %s1049_s13, 4294967264  ;;  %s19_s26 = sadd.s32 1, %s1407_s26   ;;  %s1705_s21 = smov %s1391_s22 }
 0x14c   : > { %p16_p5 = scmp.ge.s32.totalorder %s19_s26, 4   ;;  %s1706_s22 = smov %s1395_s23 }
 0x14d   : > { %s1707_s23 = smov %s1501_s10  ;;  %s1708_s24 = smov %s1403_s25 }
 0x14e   : > { %s1709_s25 = smov %s1711_s29  ;;  %18 = sbr.rel (!%p16_p5) target bundleno = 4 (0x4), region = 94 }
 0x155   :  { %1054 = vsyncpa [#allocation3], 1 }
 0x156   :  { %1056 = vsyncpa [#allocation3 + $0x1], 1 }

</bundles_post_ra>
